<compile_context>
chip_gen: v7x
topology: tpu7x:2x2x1
jax: 0.10.0
libtpu: 0.0.40
codegen_flags: <defaults>
</compile_context>

<pallas_src>
import jax
import jax.numpy as jnp
from jax.experimental import pallas as pl
from jax.experimental.pallas import tpu as pltpu


# ---------------------------------------------------------------------------
# Hardware-aware sizing helpers
# ---------------------------------------------------------------------------

def _vmem_capacity_bytes():
    """Physical VMEM per TensorCore (v5e/v6e: 128 MiB, v7x: 64 MiB)."""
    try:
        info = pltpu.get_tpu_info()
        for name in ("vmem_capacity_bytes", "vmem_size_bytes", "vmem_bytes"):
            v = getattr(info, name, None)
            if v:
                return int(v)
    except Exception:
        pass
    return 64 << 20  # conservative fallback, safe on every generation


def _sublane_packing(dtype):
    """Rows per packed sublane group: 8 for 4-byte, 16 for 2-byte, 32 for 1-byte."""
    return max(8, 32 // max(1, jnp.dtype(dtype).itemsize))


def _pick_block_rows(outer, row_bytes, budget_bytes, packing, min_steps=4):
    """Rows per grid step for the pipelined path.

    Large enough to amortize the ~0.35 us per-step overhead (measured tiled
    copy: 512+ rows ~ 85% of HBM roofline), small enough that the
    double-buffered input + output blocks (~4 * rows * row_bytes) fit
    `budget_bytes`, and capped so the grid keeps >= `min_steps` steps when
    `outer` allows (megacore sharding on v7x + read/compute/write overlap).
    """
    if outer <= packing:
        return outer                                      # full-extent block
    fit = (budget_bytes // max(1, 4 * row_bytes)) // packing * packing
    max_rows = max(packing, fit)
    steps_cap = max(packing, (outer // (min_steps * packing)) * packing)
    bn = min(max_rows, steps_cap, outer)
    if bn >= outer:
        return outer
    bn = max(packing, (bn // packing) * packing)
    # Prefer a block that divides `outer` (no ragged last block); search a
    # little way down, otherwise accept Pallas' partial-block handling.
    cand = bn
    while cand >= max(packing, bn // 2):
        if outer % cand == 0:
            return cand
        cand -= packing
    return bn


# ---------------------------------------------------------------------------
# Path 1: zero-VMEM, HBM -> HBM concurrent DMA copies
# ---------------------------------------------------------------------------

def _row_chunks(outer, n_chunks):
    bounds = []
    for c in range(n_chunks):
        r0 = (c * outer) // n_chunks
        r1 = ((c + 1) * outer) // n_chunks
        if r1 > r0:
            bounds.append((r0, r1))
    return bounds


def _make_dma_concat_kernel(n_inputs, widths, offsets, chunks):
    def kernel(*refs):
        in_refs = refs[:n_inputs]
        out_ref = refs[n_inputs]
        sems = refs[n_inputs + 1]
        copies = []
        s = 0
        # Issue every copy before waiting on any: the DMA engines run them
        # concurrently, which is what saturates HBM for a pure memcpy.
        for in_ref, off, w in zip(in_refs, offsets, widths):
            for r0, r1 in chunks:
                cp = pltpu.make_async_copy(
                    in_ref.at[r0:r1, :],                 # contiguous source rows
                    out_ref.at[r0:r1, off:off + w],      # strided destination slab
                    sems.at[s])
                cp.start()
                copies.append(cp)
                s += 1
        for cp in copies:
            cp.wait()
    return kernel


def _concat_dma(views, widths, offsets, outer, total_w, dtype, target_dmas=8):
    n_in = len(views)
    elem = jnp.dtype(dtype).itemsize
    total_bytes = 2 * outer * total_w * elem            # read once + write once
    # Split rows into a few chunks per input for DMA concurrency, but never
    # below ~256 KiB per descriptor (tiny inputs -> one DMA per input).
    per_input_bytes = max(1, (outer * total_w * elem) // n_in)
    max_useful = max(1, per_input_bytes // (256 << 10))
    n_chunks = max(1, min(outer, (target_dmas + n_in - 1) // n_in, max_useful))
    chunks = _row_chunks(outer, n_chunks)
    n_dmas = n_in * len(chunks)

    return pl.pallas_call(
        _make_dma_concat_kernel(n_in, widths, offsets, chunks),
        out_shape=jax.ShapeDtypeStruct((outer, total_w), dtype),
        in_specs=[pl.BlockSpec(memory_space=pl.ANY) for _ in views],
        out_specs=pl.BlockSpec(memory_space=pl.ANY),
        scratch_shapes=[pltpu.SemaphoreType.DMA((n_dmas,))],
        cost_estimate=pl.CostEstimate(flops=0, transcendentals=0,
                                      bytes_accessed=total_bytes),
    )(*views)


# ---------------------------------------------------------------------------
# Path 2: BlockSpec-pipelined VMEM copy (lane-aligned, many-rows case)
# ---------------------------------------------------------------------------

def _make_slice_concat_kernel(widths, offsets):
    def kernel(*refs):
        out_ref = refs[-1]
        for in_ref, o, w in zip(refs[:-1], offsets, widths):
            # Static lane slice: unmasked vst when o and w are multiples of 128.
            out_ref[:, o:o + w] = in_ref[...]
    return kernel


def _concat_pipelined(views, widths, offsets, outer, total_w, dtype):
    elem = jnp.dtype(dtype).itemsize
    row_bytes = total_w * elem
    packing = _sublane_packing(dtype)
    cap = _vmem_capacity_bytes()
    budget = (cap * 3) // 8          # tiles budget: ~48 MiB v5e/v6e, ~24 MiB v7x
    bn = _pick_block_rows(outer, row_bytes, budget, packing)
    grid = (pl.cdiv(outer, bn),)
    # Tell the compiler about the VMEM we actually intend to use.
    live_bytes = 4 * bn * row_bytes + (2 << 20)   # double-buffered in + out blocks
    vmem_limit = int(min((cap * 3) // 4, max(live_bytes, 32 << 20)))
    total_bytes = 2 * outer * row_bytes

    return pl.pallas_call(
        _make_slice_concat_kernel(widths, offsets),
        out_shape=jax.ShapeDtypeStruct((outer, total_w), dtype),
        grid_spec=pltpu.PrefetchScalarGridSpec(
            num_scalar_prefetch=0,
            grid=grid,
            in_specs=[pl.BlockSpec((bn, w), lambda n: (n, 0)) for w in widths],
            out_specs=pl.BlockSpec((bn, total_w), lambda n: (n, 0)),
        ),
        compiler_params=pltpu.CompilerParams(
            dimension_semantics=("parallel",),
            vmem_limit_bytes=vmem_limit),
        cost_estimate=pl.CostEstimate(flops=0, transcendentals=0,
                                      bytes_accessed=total_bytes),
    )(*views)


# ---------------------------------------------------------------------------
# Public wrapper (== Concat.forward)
# ---------------------------------------------------------------------------

def concat(tensors, dimension=1, *, method="auto"):
    """Pallas TPU equivalent of torch.cat(tensors, dim=dimension)."""
    tensors = list(tensors)
    assert tensors, "concat needs at least one tensor"
    if len(tensors) == 1:
        return tensors[0]

    ndim = tensors[0].ndim
    d = dimension % ndim
    base = tensors[0].shape
    for t in tensors:
        assert t.ndim == ndim
        assert all(t.shape[a] == base[a] for a in range(ndim) if a != d)

    # torch.cat promotes mixed dtypes; do the same before the copy kernel.
    dtype = jnp.result_type(*tensors)
    tensors = [t if t.dtype == dtype else t.astype(dtype) for t in tensors]

    outer = 1
    for a in range(d):
        outer *= int(base[a])
    inner = 1
    for a in range(d + 1, ndim):
        inner *= int(base[a])

    widths = [int(t.shape[d]) * inner for t in tensors]
    offsets, off = [], 0
    for w in widths:
        offsets.append(off)
        off += w
    total_w = off
    out_shape = base[:d] + (sum(int(t.shape[d]) for t in tensors),) + base[d + 1:]

    # Free reshapes (contiguous row-major): each input as lane-dense rows.
    views = [t.reshape(outer, w) for t, w in zip(tensors, widths)]

    packing = _sublane_packing(dtype)
    row_bytes = total_w * jnp.dtype(dtype).itemsize
    budget = (_vmem_capacity_bytes() * 3) // 8
    min_block_fits = 4 * packing * row_bytes <= budget

    if method == "auto":
        lane_aligned = (all(o % 128 == 0 for o in offsets)
                        and all(w % 128 == 0 for w in widths))
        enough_rows = outer >= 2 * packing
        method = "pipelined" if (lane_aligned and enough_rows and min_block_fits) \
            else "dma"
    elif method == "pipelined" and not min_block_fits:
        # Even a minimum block would overflow the per-generation VMEM budget;
        # the zero-VMEM DMA path hits the same HBM roofline, so fall back.
        method = "dma"

    if method == "pipelined":
        out2d = _concat_pipelined(views, widths, offsets, outer, total_w, dtype)
    else:
        out2d = _concat_dma(views, widths, offsets, outer, total_w, dtype)
    return out2d.reshape(out_shape)


if __name__ == "__main__":
    key = jax.random.PRNGKey(0)
    k1, k2, k3, k4, k5 = jax.random.split(key, 5)

    # 1) YOLO-style channel concat (dim=1, tiny batch) -> auto picks the
    #    zero-VMEM HBM->HBM DMA path.
    x1 = jax.random.normal(k1, (2, 4, 16, 16), jnp.float32)
    x2 = jax.random.normal(k2, (2, 8, 16, 16), jnp.float32)
    x3 = jax.random.normal(k3, (2, 2, 16, 16), jnp.float32)
    out = jax.block_until_ready(concat([x1, x2, x3], dimension=1))
    ref = jnp.concatenate([x1, x2, x3], axis=1)
    assert out.shape == ref.shape and out.dtype == ref.dtype
    assert bool(jnp.array_equal(out, ref)), "dim=1 concat mismatch"

    # 2) Last-axis concat with narrow, non-128-aligned widths -> DMA path
    #    (the DMA engine handles the unaligned byte offsets).
    out2 = jax.block_until_ready(concat([x1, x1], dimension=-1))
    ref2 = jnp.concatenate([x1, x1], axis=-1)
    assert out2.shape == ref2.shape and bool(jnp.array_equal(out2, ref2)), \
        "dim=-1 concat mismatch"

    # 3) Pipelined path: lane-aligned widths, multi-step grid, and a
    #    non-dividing `outer` (exercises partial-block handling: 20 rows, bn=8).
    y1 = jax.random.normal(k4, (20, 4, 16, 16), jnp.float32)
    y2 = jax.random.normal(k5, (20, 8, 16, 16), jnp.float32)
    out3 = jax.block_until_ready(concat([y1, y2], dimension=1, method="pipelined"))
    ref3 = jnp.concatenate([y1, y2], axis=1)
    assert out3.shape == ref3.shape and bool(jnp.array_equal(out3, ref3)), \
        "pipelined concat mismatch"

    print("KERNEL_OK")
</pallas_src>

<mosaic_0001>
module attributes {stable_mosaic.version = 11 : i64} {
  func.func @kernel(%arg0: memref<2x1024xf32, #tpu.memory_space<any>>, %arg1: memref<2x2048xf32, #tpu.memory_space<any>>, %arg2: memref<2x512xf32, #tpu.memory_space<any>>, %arg3: memref<2x3584xf32, #tpu.memory_space<any>>, %arg4: memref<3x!tpu.dma_semaphore, #tpu.memory_space<semaphore_mem>>) attributes {dimension_semantics = [], scalar_prefetch = 0 : i64, scratch_operands = 1 : i64, tpu.core_type = #tpu.core_type<tc>} {
    %c0_i32 = arith.constant 0 : i32
    %c0_i32_0 = arith.constant 0 : i32
    %c0_i32_1 = arith.constant 0 : i32
    %0 = tpu.memref_slice %arg0[%c0_i32_0, %c0_i32_1] : memref<2x1024xf32, #tpu.memory_space<any>> -> memref<2x1024xf32, #tpu.memory_space<any>>
    %c0_i32_2 = arith.constant 0 : i32
    %c0_i32_3 = arith.constant 0 : i32
    %1 = tpu.memref_slice %arg3[%c0_i32_2, %c0_i32_3] : memref<2x3584xf32, #tpu.memory_space<any>> -> memref<2x1024xf32, #tpu.memory_space<any>>
    %2 = tpu.memref_slice %arg4[%c0_i32] : memref<3x!tpu.dma_semaphore, #tpu.memory_space<semaphore_mem>> -> memref<1x!tpu.dma_semaphore, #tpu.memory_space<semaphore_mem>>
    %3 = tpu.memref_squeeze %2 : memref<1x!tpu.dma_semaphore, #tpu.memory_space<semaphore_mem>> -> memref<!tpu.dma_semaphore, #tpu.memory_space<semaphore_mem>>
    tpu.enqueue_dma source(%0 : memref<2x1024xf32, #tpu.memory_space<any>>) target(%1 : memref<2x1024xf32, #tpu.memory_space<any>>) target_semaphore(%3 : memref<!tpu.dma_semaphore, #tpu.memory_space<semaphore_mem>>)
    %c1_i32 = arith.constant 1 : i32
    %c0_i32_4 = arith.constant 0 : i32
    %c0_i32_5 = arith.constant 0 : i32
    %4 = tpu.memref_slice %arg1[%c0_i32_4, %c0_i32_5] : memref<2x2048xf32, #tpu.memory_space<any>> -> memref<2x2048xf32, #tpu.memory_space<any>>
    %c0_i32_6 = arith.constant 0 : i32
    %c1024_i32 = arith.constant 1024 : i32
    %5 = tpu.memref_slice %arg3[%c0_i32_6, %c1024_i32] : memref<2x3584xf32, #tpu.memory_space<any>> -> memref<2x2048xf32, #tpu.memory_space<any>>
    %6 = tpu.memref_slice %arg4[%c1_i32] : memref<3x!tpu.dma_semaphore, #tpu.memory_space<semaphore_mem>> -> memref<1x!tpu.dma_semaphore, #tpu.memory_space<semaphore_mem>>
    %7 = tpu.memref_squeeze %6 : memref<1x!tpu.dma_semaphore, #tpu.memory_space<semaphore_mem>> -> memref<!tpu.dma_semaphore, #tpu.memory_space<semaphore_mem>>
    tpu.enqueue_dma source(%4 : memref<2x2048xf32, #tpu.memory_space<any>>) target(%5 : memref<2x2048xf32, #tpu.memory_space<any>>) target_semaphore(%7 : memref<!tpu.dma_semaphore, #tpu.memory_space<semaphore_mem>>)
    %c2_i32 = arith.constant 2 : i32
    %c0_i32_7 = arith.constant 0 : i32
    %c0_i32_8 = arith.constant 0 : i32
    %8 = tpu.memref_slice %arg2[%c0_i32_7, %c0_i32_8] : memref<2x512xf32, #tpu.memory_space<any>> -> memref<2x512xf32, #tpu.memory_space<any>>
    %c0_i32_9 = arith.constant 0 : i32
    %c3072_i32 = arith.constant 3072 : i32
    %9 = tpu.memref_slice %arg3[%c0_i32_9, %c3072_i32] : memref<2x3584xf32, #tpu.memory_space<any>> -> memref<2x512xf32, #tpu.memory_space<any>>
    %10 = tpu.memref_slice %arg4[%c2_i32] : memref<3x!tpu.dma_semaphore, #tpu.memory_space<semaphore_mem>> -> memref<1x!tpu.dma_semaphore, #tpu.memory_space<semaphore_mem>>
    %11 = tpu.memref_squeeze %10 : memref<1x!tpu.dma_semaphore, #tpu.memory_space<semaphore_mem>> -> memref<!tpu.dma_semaphore, #tpu.memory_space<semaphore_mem>>
    tpu.enqueue_dma source(%8 : memref<2x512xf32, #tpu.memory_space<any>>) target(%9 : memref<2x512xf32, #tpu.memory_space<any>>) target_semaphore(%11 : memref<!tpu.dma_semaphore, #tpu.memory_space<semaphore_mem>>)
    %c0_i32_10 = arith.constant 0 : i32
    %c0_i32_11 = arith.constant 0 : i32
    %c0_i32_12 = arith.constant 0 : i32
    %12 = tpu.memref_slice %arg0[%c0_i32_11, %c0_i32_12] : memref<2x1024xf32, #tpu.memory_space<any>> -> memref<2x1024xf32, #tpu.memory_space<any>>
    %c0_i32_13 = arith.constant 0 : i32
    %c0_i32_14 = arith.constant 0 : i32
    %13 = tpu.memref_slice %arg3[%c0_i32_13, %c0_i32_14] : memref<2x3584xf32, #tpu.memory_space<any>> -> memref<2x1024xf32, #tpu.memory_space<any>>
    %14 = tpu.memref_slice %arg4[%c0_i32_10] : memref<3x!tpu.dma_semaphore, #tpu.memory_space<semaphore_mem>> -> memref<1x!tpu.dma_semaphore, #tpu.memory_space<semaphore_mem>>
    %15 = tpu.memref_squeeze %14 : memref<1x!tpu.dma_semaphore, #tpu.memory_space<semaphore_mem>> -> memref<!tpu.dma_semaphore, #tpu.memory_space<semaphore_mem>>
    tpu.wait_dma2 semaphore(%15 : memref<!tpu.dma_semaphore, #tpu.memory_space<semaphore_mem>>) src(%12 : memref<2x1024xf32, #tpu.memory_space<any>>) dst(%13 : memref<2x1024xf32, #tpu.memory_space<any>>)
    %c1_i32_15 = arith.constant 1 : i32
    %c0_i32_16 = arith.constant 0 : i32
    %c0_i32_17 = arith.constant 0 : i32
    %16 = tpu.memref_slice %arg1[%c0_i32_16, %c0_i32_17] : memref<2x2048xf32, #tpu.memory_space<any>> -> memref<2x2048xf32, #tpu.memory_space<any>>
    %c0_i32_18 = arith.constant 0 : i32
    %c1024_i32_19 = arith.constant 1024 : i32
    %17 = tpu.memref_slice %arg3[%c0_i32_18, %c1024_i32_19] : memref<2x3584xf32, #tpu.memory_space<any>> -> memref<2x2048xf32, #tpu.memory_space<any>>
    %18 = tpu.memref_slice %arg4[%c1_i32_15] : memref<3x!tpu.dma_semaphore, #tpu.memory_space<semaphore_mem>> -> memref<1x!tpu.dma_semaphore, #tpu.memory_space<semaphore_mem>>
    %19 = tpu.memref_squeeze %18 : memref<1x!tpu.dma_semaphore, #tpu.memory_space<semaphore_mem>> -> memref<!tpu.dma_semaphore, #tpu.memory_space<semaphore_mem>>
    tpu.wait_dma2 semaphore(%19 : memref<!tpu.dma_semaphore, #tpu.memory_space<semaphore_mem>>) src(%16 : memref<2x2048xf32, #tpu.memory_space<any>>) dst(%17 : memref<2x2048xf32, #tpu.memory_space<any>>)
    %c2_i32_20 = arith.constant 2 : i32
    %c0_i32_21 = arith.constant 0 : i32
    %c0_i32_22 = arith.constant 0 : i32
    %20 = tpu.memref_slice %arg2[%c0_i32_21, %c0_i32_22] : memref<2x512xf32, #tpu.memory_space<any>> -> memref<2x512xf32, #tpu.memory_space<any>>
    %c0_i32_23 = arith.constant 0 : i32
    %c3072_i32_24 = arith.constant 3072 : i32
    %21 = tpu.memref_slice %arg3[%c0_i32_23, %c3072_i32_24] : memref<2x3584xf32, #tpu.memory_space<any>> -> memref<2x512xf32, #tpu.memory_space<any>>
    %22 = tpu.memref_slice %arg4[%c2_i32_20] : memref<3x!tpu.dma_semaphore, #tpu.memory_space<semaphore_mem>> -> memref<1x!tpu.dma_semaphore, #tpu.memory_space<semaphore_mem>>
    %23 = tpu.memref_squeeze %22 : memref<1x!tpu.dma_semaphore, #tpu.memory_space<semaphore_mem>> -> memref<!tpu.dma_semaphore, #tpu.memory_space<semaphore_mem>>
    tpu.wait_dma2 semaphore(%23 : memref<!tpu.dma_semaphore, #tpu.memory_space<semaphore_mem>>) src(%20 : memref<2x512xf32, #tpu.memory_space<any>>) dst(%21 : memref<2x512xf32, #tpu.memory_space<any>>)
    return
  }
}

</mosaic_0001>

<bundles_post_ra>
// kernel: tpu_custom_call.1
= control target key start
LH: loop header
LB: loop body
LE: loop exit
PB: predicated region body
PF: predicated region fallthrough
CT: control target
= control target key end

     0   :  { %s97_s15 = smov [#allocation2]   ;;  %s98_s16 = smov [#allocation3]   ;;  %s142_s0 = inlined_call_operand.hbm [shape: f32[2,1024], index: 0, kind: input, shape index: {}]   ;;  %s143_s3 = inlined_call_operand.hbm [shape: f32[2,3584], index: 3, kind: output, shape index: {}]   ;;  %s144_s1 = inlined_call_operand.hbm [shape: f32[2,2048], index: 1, kind: input, shape index: {}]   ;;  %s145_s2 = inlined_call_operand.hbm [shape: f32[2,512], index: 2, kind: input, shape index: {}]  }
   0x1   :  { %s21_s14 = scalar_lea.hbm %s143_s3, 256  ;;  %s99_s17 = smov 0  }
   0x2   :  { %20 = dma.general %s142_s0, 256, %s143_s3, %s97_s15, %s98_s16, [#allocation4], %s99_s17, 0  }
   0x3   :  { %s36_s24 = scalar_lea.hbm %s143_s3, 768  ;;  %s100_s25 = smov [#allocation2 + $0x1]  }
   0x4   :  { %s101_s26 = smov [#allocation5]   ;;  %s102_s29 = smov [#allocation2 + $0x2]  }
   0x5   :  { %35 = dma.general %s144_s1, 512, %s21_s14, %s100_s25, %s101_s26, [#allocation6], %s99_s17, 0  }
   0x6   :  { %s103_s30 = smov [#allocation7]  }
   0x7   :  { %50 = dma.general %s145_s2, 128, %s36_s24, %s102_s29, %s103_s30, [#allocation8], %s99_s17, 0  }
   0x8   :  { %91 = dma.done.wait [#allocation2], 256 }
   0x9   :  { %92 = vsyncadd [#allocation2], 4294967040 }
   0xa   :  { %93 = dma.done.wait [#allocation2 + $0x1], 512 }
   0xb   :  { %94 = vsyncadd [#allocation2 + $0x1], 4294966784 }
   0xc   :  { %95 = dma.done.wait [#allocation2 + $0x2], 128 }
   0xd   :  { %96 = vsyncadd [#allocation2 + $0x2], 4294967168 }
   0xe   :  { %61 = vsyncmov [#allocation2] }
  0x11   :  { %s62_s0 = vpop.sfrf %61 }
  0x12   :  { %p81_p0 = scmp.ne.s32.totalorder %s62_s0, 0 }
  0x14   :  { %66 = shalt.err (%p81_p0)  }
  0x15   :  { %68 = vsyncmov [#allocation2 + $0x1] }
  0x18   :  { %s69_s3 = vpop.sfrf %68 }
  0x19   :  { %p82_p1 = scmp.ne.s32.totalorder %s69_s3, 0 }
  0x1b   :  { %73 = shalt.err (%p82_p1)  }
  0x1c   :  { %75 = vsyncmov [#allocation2 + $0x2] }
  0x1f   :  { %s76_s1 = vpop.sfrf %75 }
  0x20   :  { %p83_p2 = scmp.ne.s32.totalorder %s76_s1, 0 }
  0x22   :  { %80 = shalt.err (%p83_p2)  }

</bundles_post_ra>
